<compile_context>
chip_gen: v7x
topology: tpu7x:2x2x1
jax: 0.10.0
libtpu: 0.0.40
codegen_flags: <defaults>
</compile_context>

<pallas_src>
import jax
import jax.numpy as jnp
from jax.experimental import pallas as pl
from jax.experimental.pallas import tpu as pltpu


def _resolve_shape(shape, numel):
    """torch.Tensor.view semantics: at most one -1; sizes must multiply to numel."""
    shape = tuple(int(s) for s in shape)
    if shape.count(-1) > 1:
        raise ValueError("only one dimension can be inferred (-1)")
    if -1 in shape:
        known = 1
        for s in shape:
            if s != -1:
                known *= s
        if known == 0 or numel % known != 0:
            raise ValueError(f"cannot view {numel} elements as {shape}")
        shape = tuple(numel // known if s == -1 else s for s in shape)
    else:
        prod = 1
        for s in shape:
            prod *= s
        if prod != numel:
            raise ValueError(f"cannot view {numel} elements as {shape}")
    return shape


def _lane_dense_factor(n):
    """Split n == m * c with c the largest multiple-of-128 divisor (<= 32768).
    Returns None when n has no multiple-of-128 divisor."""
    best = None
    c = 128
    limit = min(n, 32768)
    while c <= limit:
        if n % c == 0:
            best = c
        c += 128
    if best is None:
        return None
    return n // best, best


def _copy_kernel(x_ref, o_ref):
    o_ref[...] = x_ref[...]


_TILE_BYTES = 8 * 1024 * 1024      # per-tile budget; 4 in-flight buffers ~= 32 MiB


def reshape(x, *shape):
    """Pallas equivalent of torch `x.view(*shape)` (row-major, contiguous)."""
    numel = int(x.size)
    target = _resolve_shape(shape, numel)

    # Degenerate / non-lane-dense cases: the reshape is metadata-only anyway,
    # so skip the kernel entirely (faster and avoids masked 1-sublane stores).
    if numel == 0:
        return jnp.reshape(x, target)
    fac = _lane_dense_factor(numel)
    if fac is None:
        return jnp.reshape(x, target)

    m, c = fac
    flat = x.reshape(m, c)                        # metadata-only: x is contiguous

    itemsize = flat.dtype.itemsize
    # Sublane alignment matched to the packed dtype (8 f32 / 16 bf16 / 32 int8).
    align = {4: 8, 2: 16, 1: 32}.get(itemsize, 8)

    # Fixed tile height: largest aligned row count within the tile budget.
    cap_rows = max(align, (_TILE_BYTES // (itemsize * c)) // align * align)
    if m <= cap_rows:
        # Fits in one step: split into two aligned steps when possible so the
        # "parallel" grid axis can be shared across v7x's 2 TensorCores.
        half = -(-m // 2)
        half = -(-half // align) * align
        tm = half if 0 < half < m else m
    else:
        tm = cap_rows
    grid = pl.cdiv(m, tm)                         # Pallas masks the partial tail block

    out = pl.pallas_call(
        _copy_kernel,
        out_shape=jax.ShapeDtypeStruct((m, c), x.dtype),
        grid=(grid,),
        in_specs=[pl.BlockSpec((tm, c), lambda i: (i, 0))],
        out_specs=pl.BlockSpec((tm, c), lambda i: (i, 0)),
        input_output_aliases={0: 0},              # output reuses the input HBM buffer
        compiler_params=pltpu.CompilerParams(
            dimension_semantics=("parallel",),
            vmem_limit_bytes=48 * 1024 * 1024),   # < v7x 64 MiB physical; >> 4 x 8 MiB
        cost_estimate=pl.CostEstimate(
            flops=0, transcendentals=0,
            bytes_accessed=2 * numel * itemsize),
    )(flat)
    return out.reshape(target)                    # metadata-only


class Reshape:
    """Mirror of the PyTorch module: Reshape(*args)(x) == x.view(*args)."""

    def __init__(self, *args):
        self.shape = args

    def __call__(self, x):
        return reshape(x, *self.shape)


if __name__ == "__main__":
    key = jax.random.PRNGKey(0)
    x = jax.random.normal(key, (2, 4, 16, 16), jnp.float32)   # 2048 elements
    mod = Reshape(-1, 8, 8, 16)                               # -> (2, 8, 8, 16)
    y = jax.block_until_ready(mod(x))
    assert y.shape == (2, 8, 8, 16), y.shape
    # row-major view semantics: flat element order must be unchanged
    assert bool(jnp.array_equal(y.reshape(-1), x.reshape(-1)))

    # fully specified shape (no -1), like torch view
    y2 = jax.block_until_ready(Reshape(2, 64, 16)(x))
    assert y2.shape == (2, 64, 16), y2.shape
    assert bool(jnp.array_equal(y2.reshape(-1), x.reshape(-1)))

    # bf16 path exercises the dtype-aware sublane alignment
    xb = x.astype(jnp.bfloat16)
    y3 = jax.block_until_ready(Reshape(-1, 16)(xb))
    assert y3.shape == (128, 16), y3.shape
    assert bool(jnp.array_equal(y3.reshape(-1), xb.reshape(-1)))

    print("KERNEL_OK")
</pallas_src>

<mosaic_0001>
module attributes {stable_mosaic.version = 11 : i64} {
  func.func @_copy_kernel(%arg0: i32, %arg1: memref<1x2048xf32, #tpu.memory_space<vmem>>, %arg2: memref<1x2048xf32, #tpu.memory_space<vmem>>) attributes {dimension_semantics = [#tpu.dimension_semantics<parallel>], iteration_bounds = array<i64: 1>, scalar_prefetch = 0 : i64, scratch_operands = 0 : i64, tpu.core_type = #tpu.core_type<tc>, window_params = [{transform_indices = @transform_0, window_bounds = array<i64: 1, 2048>}, {transform_indices = @transform_1, window_bounds = array<i64: 1, 2048>}]} {
    %c0 = arith.constant 0 : index
    %c0_0 = arith.constant 0 : index
    %0 = vector.load %arg1[%c0, %c0_0] : memref<1x2048xf32, #tpu.memory_space<vmem>>, vector<1x2048xf32>
    %c0_1 = arith.constant 0 : index
    %c0_2 = arith.constant 0 : index
    %1 = vector.load %arg2[%c0_1, %c0_2] : memref<1x2048xf32, #tpu.memory_space<vmem>>, vector<1x2048xf32>
    tpu.vector_store %arg2[%c0_1, %c0_2], %0 {strides = array<i32>} : memref<1x2048xf32, #tpu.memory_space<vmem>>, vector<1x2048xf32>,
    return
  }
  func.func @transform_0(%arg0: i32) -> (i32, i32) {
    %c0_i32 = arith.constant 0 : i32
    %c0_i32_0 = arith.constant 0 : i32
    return %arg0, %c0_i32 : i32, i32
  }
  func.func @transform_1(%arg0: i32) -> (i32, i32) {
    %c0_i32 = arith.constant 0 : i32
    %c0_i32_0 = arith.constant 0 : i32
    return %arg0, %c0_i32 : i32, i32
  }
}

</mosaic_0001>

<bundles_post_ra>
// kernel: tpu_custom_call.1
= control target key start
LH: loop header
LB: loop body
LE: loop exit
PB: predicated region body
PF: predicated region fallthrough
CT: control target
= control target key end

     0   :  { %6 = vsyncpa [#allocation3], 0  ;;  %s126_s0 = inlined_call_operand.hbm [shape: f32[1,2048], index: 0, kind: input, shape index: {}, may-alias: {0,1}]   ;;  %s127_s1 = inlined_call_operand.hbm [shape: f32[1,2048], index: 1, kind: output, shape index: {}, may-alias: {0,1}]  }
   0x1   :  { %7 = vsyncpa [#allocation4], 0  ;;  %s90_s6 = smov [#allocation2]   ;;  %s42_s10 = scalar_lea.hbm %s126_s0, 256 }
   0x2   :  { %s14_s7 = sshll.u32 %s90_s6, 4  ;;  %p43_p0 = scmp.ne.s32.totalorder %s126_s0, %s42_s10  ;;  %s15_s7 = int_to_ptr.vmem [resolvable:$true] %s14_s7 }
   0x3   :  { %p46_p1 = scmp.lt.u32.totalorder %s42_s10, %s126_s0 }
   0x5   :  { %p48_p2 = pnand %p46_p1, %p43_p0 }
   0x7   :  { %51 = shalt.err (!%p48_p2)
}
   0x8   :  { %s52_s15 = scalar_lea.vmem %s15_s7, 256  ;;  %p57_p4 = scmp.lt.s32.totalorder %s15_s7, %s15_s7 }
   0x9   :  { %p53_p3 = scmp.ne.s32.totalorder %s15_s7, %s52_s15  ;;  %p58_p5 = scmp.lt.s32.totalorder %s52_s15, %s52_s15 }
   0xb   :  { %p59_p6 = por %p58_p5, %p57_p4 }
   0xd   :  { %p60_p7 = pnand %p59_p6, %p53_p3 }
   0xf   :  { %63 = shalt.err (!%p60_p7)
}
  0x10   :  { %17 = dma.hbm_to_vmem [thread:$0]  %s126_s0, 256, %s15_s7, [#allocation3]  }
  0x11   :  { %86 = dma.done.wait [#allocation3], 256  }
  0x12   :  { %87 = vsyncadd [#allocation3], 4294967040  ;;  %s91_s18 = smov [#allocation5]   ;;  %v21_v0 = vld [vmem:[#allocation2] sm:$0xff]  ;;  %v22_v1 = vld [vmem:[#allocation2 + $0x8] sm:$0xff] }
  0x13   :  { %s31_s19 = sshll.u32 %s91_s18, 4  ;;  %23 = vst [vmem:[#allocation5] sm:$0xff] %v21_v0  ;;  %24 = vst [vmem:[#allocation5 + $0x8] sm:$0xff] %v22_v1  ;;  %s32_s19 = int_to_ptr.vmem [resolvable:$true] %s31_s19 }
  0x14   :  { %s64_s20 = scalar_lea.vmem %s32_s19, 256  ;;  %p69_p9 = scmp.lt.s32.totalorder %s32_s19, %s32_s19 }
  0x15   :  { %p65_p8 = scmp.ne.s32.totalorder %s32_s19, %s64_s20  ;;  %p70_p10 = scmp.lt.s32.totalorder %s64_s20, %s64_s20 }
  0x17   :  { %p71_p11 = por %p70_p10, %p69_p9 }
  0x19   :  { %p72_p12 = pnand %p71_p11, %p65_p8 }
  0x1b   :  { %75 = shalt.err (!%p72_p12)
}
  0x1c   :  { %s76_s0 = scalar_lea.hbm %s127_s1, 256 }
  0x1d   :  { %p77_p13 = scmp.ne.s32.totalorder %s127_s1, %s76_s0  ;;  %p80_p0 = scmp.lt.u32.totalorder %s76_s0, %s127_s1 }
  0x1f   :  { %p82_p1 = pnand %p80_p0, %p77_p13 }
  0x21   :  { %85 = shalt.err (!%p82_p1)
}
  0x22   :  { %34 = dma.vmem_to_hbm [thread:$0]  %s32_s19, 256, %s127_s1, [#allocation4]  }
  0x23   :  { %88 = dma.done.wait [#allocation4], 256  }
  0x24   :  { %89 = vsyncadd [#allocation4], 4294967040 }
  0x25   :  { %38 = vsyncpa [#allocation3], 1 }
  0x26   :  { %39 = vsyncpa [#allocation4], 1 }

</bundles_post_ra>
